<compile_context>
chip_gen: v7x
topology: tpu7x:2x2x1
jax: 0.10.0
libtpu: 0.0.40
codegen_flags: <defaults>
</compile_context>

<pallas_src>
import functools

import numpy as np
import jax
import jax.numpy as jnp
from jax.experimental import pallas as pl
from jax.experimental.pallas import tpu as pltpu


_TARGET_BLOCK_BYTES = 4 << 20   # write-only block; 2x double-buffered output <= ~8 MiB live.
_SPLIT_MIN_BYTES = 1 << 20      # only split a single-block slab for megacore if halves >= ~512 KiB.
_FLAT_BLOCK_BYTES = 512 << 10   # data bytes per (1,1,tF) block (sublane padding inflates ~8x in VMEM).
_SCALE_BLOCK_BYTES = 1 << 20    # last-resort read-multiply-write kernel (input + output both live).


# ---------------------------------------------------------------------------
# geometry helpers (host-side, pure python)
# ---------------------------------------------------------------------------
def _sublane_pack(itemsize):
    # sublane packing granularity: 8 for 4-byte, 16 for 2-byte, 32 for 1-byte dtypes
    return max(8, 32 // int(itemsize))


def _pick_geometry(F, pack):
    """Factor F == R * L with L % 128 == 0; prefer sublane-dense (R % pack == 0) + wide lanes.

    Returns (R, L), or None if F is not a multiple of 128 (flat fallback used)."""
    fallback = None
    for L in (4096, 2048, 1024, 512, 256, 128):
        if F % L:
            continue
        R = F // L
        if R % pack == 0:
            return R, L
        if fallback is None:
            fallback = (R, L)
    return fallback


def _row_tile(R, L, itemsize, pack):
    rows = _TARGET_BLOCK_BYTES // (L * itemsize)
    if rows >= R:
        # Whole per-sample slab fits one block.  If it is big enough, split it so the
        # leading ("parallel") grid axis has extent >= 2 -> both v7x TCs get work.
        if R >= 2 * pack and R * L * itemsize >= _SPLIT_MIN_BYTES:
            half = ((R // 2) // pack) * pack
            if half >= pack:
                return half
        return R
    return max(pack, (rows // pack) * pack)   # pack-aligned sublanes; ragged tail masked via cdiv


def _next_pow2(n):
    return 1 << (int(n) - 1).bit_length()


# ---------------------------------------------------------------------------
# Kernel body: write-only zero fill of the current (dropped-row) output block
# ---------------------------------------------------------------------------
def _zero_rows_kernel(dropped_ref, x_ref, o_ref):
    # dropped_ref: (npad,) int32 in SMEM (scalar prefetch) -- only used by the index_map.
    # x_ref: aliased HBM operand, never read.  o_ref: VMEM block of a dropped row.
    del dropped_ref, x_ref
    o_ref[...] = jnp.zeros_like(o_ref)


# ---------------------------------------------------------------------------
# Fast path: in-place, write-only zeroing of dropped batch rows (F % 128 == 0)
# ---------------------------------------------------------------------------
@functools.partial(jax.jit, static_argnums=(2, 3), donate_argnums=(0,))
def _zero_dropped_rows(x, dropped_idx, R, L):
    orig_shape = x.shape
    B = orig_shape[0]
    x3 = x.reshape(B, R, L)                    # row-major reshape == layout bitcast, no HBM pass
    itemsize = x.dtype.itemsize
    pack = _sublane_pack(itemsize)
    tR = _row_tile(R, L, itemsize, pack)
    npad = dropped_idx.shape[0]                # stable bucket size -> stable grid -> no recompiles
    out3 = pl.pallas_call(
        _zero_rows_kernel,
        out_shape=jax.ShapeDtypeStruct((B, R, L), x.dtype),
        grid_spec=pltpu.PrefetchScalarGridSpec(
            num_scalar_prefetch=1,
            # leading axis = row-blocks ("parallel", disjoint HBM regions);
            # trailing axis = padded dropped rows ("arbitrary": padding repeats indices).
            grid=(pl.cdiv(R, tR), npad),
            in_specs=[pl.BlockSpec(memory_space=pl.ANY)],   # x stays in HBM: no input DMA
            out_specs=pl.BlockSpec(
                (1, tR, L), lambda j, i, dropped: (dropped[i], j, 0)),
        ),
        # Alias x (operand 1; the scalar-prefetch array is operand 0) to the output so
        # the untouched (kept) rows keep their original contents.
        input_output_aliases={1: 0},
        compiler_params=pltpu.CompilerParams(
            dimension_semantics=("parallel", "arbitrary")),
    )(dropped_idx, x3)
    return out3.reshape(orig_shape)


# ---------------------------------------------------------------------------
# In-place path for non-128-aligned trailing sizes: view (B, 1, F), lane-tiled
# ---------------------------------------------------------------------------
@functools.partial(jax.jit, donate_argnums=(0,))
def _zero_dropped_flat(x, dropped_idx):
    orig_shape = x.shape
    B = orig_shape[0]
    F = int(np.prod(orig_shape[1:]))
    x3 = x.reshape(B, 1, F)
    itemsize = x.dtype.itemsize
    max_tf = max(128, (_FLAT_BLOCK_BYTES // itemsize) // 128 * 128)
    tF = F if F <= max_tf else max_tf          # tF == F (full dim) or a multiple of 128
    npad = dropped_idx.shape[0]
    out3 = pl.pallas_call(
        _zero_rows_kernel,
        out_shape=jax.ShapeDtypeStruct((B, 1, F), x.dtype),
        grid_spec=pltpu.PrefetchScalarGridSpec(
            num_scalar_prefetch=1,
            grid=(pl.cdiv(F, tF), npad),
            in_specs=[pl.BlockSpec(memory_space=pl.ANY)],
            out_specs=pl.BlockSpec(
                (1, 1, tF), lambda j, i, dropped: (dropped[i], 0, j)),
        ),
        input_output_aliases={1: 0},
        compiler_params=pltpu.CompilerParams(
            dimension_semantics=("parallel", "arbitrary")),
    )(dropped_idx, x3)
    return out3.reshape(orig_shape)


# ---------------------------------------------------------------------------
# Last resort: out-of-place broadcast multiply (only if aliasing probe fails)
# ---------------------------------------------------------------------------
def _scale_kernel(mult_ref, x_ref, o_ref):
    # mult_ref: (B, 1) resident block; x_ref / o_ref: (B, tF)
    o_ref[...] = x_ref[...] * mult_ref[...]


@jax.jit
def _droppath_scale(x, mult):
    """out[b] = x[b] * mult[b]; only used when the in-place aliased kernels are unavailable."""
    orig_shape = x.shape
    B = orig_shape[0]
    x2 = x.reshape(B, -1)
    F = x2.shape[1]
    tF = max(128, (_SCALE_BLOCK_BYTES // (B * x.dtype.itemsize)) // 128 * 128)
    tF = F if tF >= F else tF
    mult2d = mult.reshape(B, 1).astype(x.dtype)
    out = pl.pallas_call(
        _scale_kernel,
        out_shape=jax.ShapeDtypeStruct((B, F), x.dtype),
        grid_spec=pltpu.PrefetchScalarGridSpec(
            num_scalar_prefetch=0,
            grid=(pl.cdiv(F, tF),),
            in_specs=[pl.BlockSpec((B, 1), lambda j: (0, 0)),
                      pl.BlockSpec((B, tF), lambda j: (0, j))],
            out_specs=pl.BlockSpec((B, tF), lambda j: (0, j)),
        ),
        compiler_params=pltpu.CompilerParams(dimension_semantics=("parallel",)),
    )(mult2d, x2)
    return out.reshape(orig_shape)


# ---------------------------------------------------------------------------
# One-time capability + correctness probes for the aliased write-only kernels
# ---------------------------------------------------------------------------
_PROBE_CACHE = {}


def _probe_once(key, fn):
    if key not in _PROBE_CACHE:
        try:
            _PROBE_CACHE[key] = bool(fn())
        except Exception:
            _PROBE_CACHE[key] = False
    return _PROBE_CACHE[key]


def _rows_inplace_ok():
    def run():
        probe = jnp.concatenate([jnp.ones((1, 8, 128), jnp.float32),
                                 jnp.full((1, 8, 128), 2.0, jnp.float32)])
        got = np.asarray(_zero_dropped_rows(probe, jnp.array([1], jnp.int32), 8, 128))
        return (got[0] == 1.0).all() and (got[1] == 0.0).all()
    return _probe_once("rows", run)


def _flat_inplace_ok():
    def run():
        probe = jnp.concatenate([jnp.ones((1, 3, 5), jnp.float32),
                                 jnp.full((1, 3, 5), 2.0, jnp.float32)])
        got = np.asarray(_zero_dropped_flat(probe, jnp.array([0], jnp.int32)))
        return (got[0] == 0.0).all() and (got[1] == 2.0).all()
    return _probe_once("flat", run)


# ---------------------------------------------------------------------------
# DropPath module (matches the PyTorch reference forward semantics)
# ---------------------------------------------------------------------------
def _as_rng(rng):
    if isinstance(rng, np.random.Generator):
        return rng
    return np.random.default_rng(rng)


class DropPath:
    """DropPath without rescaling; supports optional all-zero / all-keep.

    NOTE: when an in-place path is taken, the inputs handed to __call__ are donated
    (invalidated) -- keep a copy if you need them afterwards.  If nothing is dropped
    the original array objects are returned untouched.
    """

    def __init__(self, p):
        self.p = p
        self.training = True

    # host-side (numpy) replica of the torch mask logic -- no device round-trips
    def _multiplier(self, rng, b, zero=None, keep=None):
        n = int((rng.random(b) < self.p).sum())
        mask = np.ones(b, dtype=bool)
        if keep is not None:
            mask[np.asarray(keep)] = False
        if zero is not None:
            mask[np.asarray(zero)] = False
        index = np.where(mask)[0]
        index = index[rng.permutation(len(index))[:n]]
        if zero is not None:
            index = np.concatenate([index, np.where(np.asarray(zero))[0]])
        mult = np.ones(b, dtype=np.float32)
        mult[index] = 0.0
        return mult

    def _apply(self, u, mult_np, dropped_dev):
        F = int(np.prod(u.shape[1:]))
        pack = _sublane_pack(np.dtype(u.dtype).itemsize)
        geom = _pick_geometry(F, pack)
        if geom is not None and _rows_inplace_ok():
            return _zero_dropped_rows(u, dropped_dev, *geom)
        if geom is None and _flat_inplace_ok():
            return _zero_dropped_flat(u, dropped_dev)
        return _droppath_scale(u, jnp.asarray(mult_np))

    def __call__(self, *args, rng=None, zero=None, keep=None):
        if not self.training:
            return args[0] if len(args) == 1 else args
        x = args[0]
        b = x.shape[0]
        mult = self._multiplier(_as_rng(rng), b, zero=zero, keep=keep)
        dropped = np.nonzero(mult == 0.0)[0].astype(np.int32)

        if dropped.size == 0:           # nothing dropped: multiplier is all ones
            return args[0] if len(args) == 1 else args

        # Pad the dropped-index list to a stable bucket size (next power of two,
        # capped at b) by repeating the last index.  This keeps the grid shape --
        # and hence the compiled kernel -- stable across training steps even though
        # the number of dropped rows is random.  Duplicate zero-writes are idempotent.
        npad = min(_next_pow2(dropped.size), b)
        if npad > dropped.size:
            dropped = np.concatenate(
                [dropped, np.full(npad - dropped.size, dropped[-1], np.int32)])

        dropped_dev = jnp.asarray(dropped)
        outputs = tuple(self._apply(u, mult, dropped_dev) for u in args)
        return outputs[0] if len(outputs) == 1 else outputs


# ---------------------------------------------------------------------------
if __name__ == "__main__":
    B, C, H, W = 2, 4, 16, 16                               # NCHW conv convention
    x = jax.random.normal(jax.random.PRNGKey(0), (B, C, H, W), dtype=jnp.float32)
    x_np = np.asarray(x)                                    # snapshot: x may be donated

    module = DropPath(p=0.5)
    module.training = True

    # (1) deterministic mask via zero/keep: row 0 force-dropped, row 1 force-kept.
    out = jax.block_until_ready(
        module(x, rng=0, zero=np.array([True, False]), keep=np.array([1])))
    ref = x_np * np.array([0.0, 1.0], np.float32).reshape(B, 1, 1, 1)
    assert out.shape == x_np.shape and out.dtype == jnp.float32
    np.testing.assert_allclose(np.asarray(out), ref, rtol=0, atol=0)

    # (2) random-mask path: reference recomputed with the same host RNG seed.
    x2 = jax.random.normal(jax.random.PRNGKey(1), (B, C, H, W), dtype=jnp.float32)
    x2_np = np.asarray(x2)
    mult2 = module._multiplier(np.random.default_rng(42), B)
    out2 = jax.block_until_ready(module(x2, rng=42))
    np.testing.assert_allclose(np.asarray(out2),
                               x2_np * mult2.reshape(B, 1, 1, 1), rtol=0, atol=0)

    # (3) non-128-aligned trailing size (3*5*7 = 105): in-place flat path.
    x3 = jax.random.normal(jax.random.PRNGKey(2), (2, 3, 5, 7), dtype=jnp.float32)
    x3_np = np.asarray(x3)
    out3 = jax.block_until_ready(
        module(x3, rng=3, zero=np.array([True, False]), keep=np.array([1])))
    np.testing.assert_allclose(
        np.asarray(out3),
        x3_np * np.array([0.0, 1.0], np.float32).reshape(2, 1, 1, 1),
        rtol=0, atol=0)

    # (4) eval mode is the identity.
    module.training = False
    x4 = jnp.ones((B, C, H, W), jnp.float32)
    assert module(x4) is x4

    print("KERNEL_OK")
</pallas_src>

<mosaic_0001>
module attributes {stable_mosaic.version = 11 : i64} {
  func.func @_zero_rows_kernel(%arg0: i32, %arg1: i32, %arg2: memref<1xi32, #tpu.memory_space<smem>>, %arg3: memref<2x8x128xf32, #tpu.memory_space<any>>, %arg4: memref<1x8x128xf32, #tpu.memory_space<vmem>>) attributes {dimension_semantics = [#tpu.dimension_semantics<parallel>, #tpu.dimension_semantics<arbitrary>], iteration_bounds = array<i64: 1, 1>, scalar_prefetch = 1 : i64, scratch_operands = 0 : i64, tpu.core_type = #tpu.core_type<tc>, window_params = [{}, {transform_indices = @transform_1, window_bounds = array<i64: 1, 8, 128>}]} {
    %cst = arith.constant 0.000000e+00 : f32
    %0 = vector.broadcast %cst : f32 to vector<1x8x128xf32>
    %c0 = arith.constant 0 : index
    %c0_0 = arith.constant 0 : index
    %c0_1 = arith.constant 0 : index
    %1 = vector.load %arg4[%c0, %c0_0, %c0_1] : memref<1x8x128xf32, #tpu.memory_space<vmem>>, vector<1x8x128xf32>
    tpu.vector_store %arg4[%c0, %c0_0, %c0_1], %0 {strides = array<i32>} : memref<1x8x128xf32, #tpu.memory_space<vmem>>, vector<1x8x128xf32>,
    return
  }
  func.func @transform_1(%arg0: i32, %arg1: i32, %arg2: memref<1xi32, #tpu.memory_space<smem>>) -> (i32, i32, i32) {
    %0 = arith.index_cast %arg1 : i32 to index
    %1 = memref.load %arg2[%0] : memref<1xi32, #tpu.memory_space<smem>>
    %c0_i32 = arith.constant 0 : i32
    %c0_i32_0 = arith.constant 0 : i32
    return %1, %arg0, %c0_i32 : i32, i32, i32
  }
}

module attributes {stable_mosaic.version = 11 : i64} {
  func.func @_scale_kernel(%arg0: i32, %arg1: memref<2x1xf32, #tpu.memory_space<vmem>>, %arg2: memref<2x1024xf32, #tpu.memory_space<vmem>>, %arg3: memref<2x1024xf32, #tpu.memory_space<vmem>>) attributes {dimension_semantics = [#tpu.dimension_semantics<parallel>], iteration_bounds = array<i64: 1>, scalar_prefetch = 0 : i64, scratch_operands = 0 : i64, tpu.core_type = #tpu.core_type<tc>, window_params = [{pipeline_mode = #tpu.pipeline_mode<synchronous>, transform_indices = @transform_0, window_bounds = array<i64: 2, 1>}, {transform_indices = @transform_1, window_bounds = array<i64: 2, 1024>}, {transform_indices = @transform_2, window_bounds = array<i64: 2, 1024>}]} {
    %c0 = arith.constant 0 : index
    %c0_0 = arith.constant 0 : index
    %0 = vector.load %arg2[%c0, %c0_0] : memref<2x1024xf32, #tpu.memory_space<vmem>>, vector<2x1024xf32>
    %c0_1 = arith.constant 0 : index
    %c0_2 = arith.constant 0 : index
    %1 = vector.load %arg1[%c0_1, %c0_2] : memref<2x1xf32, #tpu.memory_space<vmem>>, vector<2x1xf32>
    %2 = vector.broadcast %1 : vector<2x1xf32> to vector<2x1024xf32>
    %3 = arith.mulf %0, %2 : vector<2x1024xf32>
    %c0_3 = arith.constant 0 : index
    %c0_4 = arith.constant 0 : index
    %4 = vector.load %arg3[%c0_3, %c0_4] : memref<2x1024xf32, #tpu.memory_space<vmem>>, vector<2x1024xf32>
    tpu.vector_store %arg3[%c0_3, %c0_4], %3 {strides = array<i32>} : memref<2x1024xf32, #tpu.memory_space<vmem>>, vector<2x1024xf32>,
    return
  }
  func.func @transform_0(%arg0: i32) -> (i32, i32) {
    %c0_i32 = arith.constant 0 : i32
    %c0_i32_0 = arith.constant 0 : i32
    %c0_i32_1 = arith.constant 0 : i32
    return %c0_i32, %c0_i32_0 : i32, i32
  }
  func.func @transform_1(%arg0: i32) -> (i32, i32) {
    %c0_i32 = arith.constant 0 : i32
    %c0_i32_0 = arith.constant 0 : i32
    return %c0_i32, %arg0 : i32, i32
  }
  func.func @transform_2(%arg0: i32) -> (i32, i32) {
    %c0_i32 = arith.constant 0 : i32
    %c0_i32_0 = arith.constant 0 : i32
    return %c0_i32, %arg0 : i32, i32
  }
}

</mosaic_0001>

<bundles_post_ra>
// kernel: _zero_dropped_rows.1
= control target key start
LH: loop header
LB: loop body
LE: loop exit
PB: predicated region body
PF: predicated region fallthrough
CT: control target
= control target key end

     0   :  { %8 = vsyncpa [#allocation5], 0  ;;  %v59_v0 = vmov 0.0   ;;  %s60_s15 = smov [#allocation4]   ;;  %s88_s0 = inlined_call_operand.<no memory space> [shape: s32[1], index: 0, kind: input, shape index: {}]   ;;  %s89_s1 = inlined_call_operand.hbm [shape: f32[2,8,128], index: 1, kind: input, shape index: {}, may-alias: {1,2}]   ;;  %s90_s2 = inlined_call_operand.hbm [shape: f32[2,8,128], index: 2, kind: output, shape index: {}, may-alias: {1,2}]  }
   0x1   :  { %s30_s11 = sshll.u32 %s88_s0, 7  ;;  %10 = vst [vmem:[#allocation4] sm:$0xff] %v59_v0  ;;  %s20_s16 = sshll.u32 %s60_s15, 4  ;;  %s21_s16 = int_to_ptr.vmem [resolvable:$true] %s20_s16 }
   0x2   :  { %s18_s14 = scalar_lea.hbm %s90_s2, %s30_s11  ;;  %s33_s17 = scalar_lea.vmem %s21_s16, 128 }
   0x3   :  { %p34_p0 = scmp.ne.s32.totalorder %s21_s16, %s33_s17  ;;  %p38_p1 = scmp.lt.s32.totalorder %s21_s16, %s21_s16 }
   0x4   :  { %p39_p2 = scmp.lt.s32.totalorder %s33_s17, %s33_s17 }
   0x6   :  { %p40_p3 = por %p39_p2, %p38_p1 }
   0x8   :  { %p41_p4 = pnand %p40_p3, %p34_p0 }
   0xa   :  { %44 = shalt.err (!%p41_p4)
}
   0xb   :  { %s45_s1 = scalar_lea.hbm %s18_s14, 128  ;;  %s47_s19 = scalar_lea.hbm %s90_s2, 256 }
   0xc   :  { %p46_p5 = scmp.ne.s32.totalorder %s18_s14, %s45_s1  ;;  %p48_p6 = scmp.lt.u32.totalorder %s18_s14, %s90_s2 }
   0xd   :  { %p49_p7 = scmp.lt.u32.totalorder %s47_s19, %s45_s1  ;;  %p51_p9 = scmp.lt.u32.totalorder %s45_s1, %s18_s14 }
   0xf   :  { %p50_p8 = por %p49_p7, %p48_p6 }
  0x11   :  { %p52_p10 = por %p51_p9, %p50_p8 }
  0x13   :  { %p53_p11 = pnand %p52_p10, %p46_p5 }
  0x15   :  { %56 = shalt.err (!%p53_p11)
}
  0x16   :  { %23 = dma.vmem_to_hbm [thread:$0]  %s21_s16, 128, %s18_s14, [#allocation5]  }
  0x17   :  { %57 = dma.done.wait [#allocation5], 128  }
  0x18   :  { %58 = vsyncadd [#allocation5], 4294967168 }
  0x19   :  { %27 = vsyncpa [#allocation5], 1 }

// kernel: _droppath_scale.1
= control target key start
LH: loop header
LB: loop body
LE: loop exit
PB: predicated region body
PF: predicated region fallthrough
CT: control target
= control target key end

     0   :  { %v37_v0 = vmov 0   ;;  %v38_v2 = vmov 269488144   ;;  %v21_v4 = vlaneseq  ;;  %s69_s0 = inlined_call_operand.vmem [shape: f32[2,1], index: 0, kind: input, shape index: {}]   ;;  %s70_s1 = inlined_call_operand.vmem [shape: f32[2,1024], index: 1, kind: input, shape index: {}]   ;;  %s71_s2 = inlined_call_operand.vmem [shape: f32[2,1024], index: 2, kind: output, shape index: {}]  }
   0x1   :  { %36 = vset.pattern.permute.xlu0 %v37_v0  ;;  %v13_v1 = vld [vmem:[%s69_s0] sm:$0x3]  ;;  %v19_v3 = vunpack.c.l.s4 %v38_v2  ;;  %v12_v9 = vld [vmem:[%s70_s1 + $0x8] sm:$0xff] }
   0x2   :  { %16 = vperm.xlu0 %36, %v13_v1   ;;  %v22_v6 = vshrl.u32 %v21_v4, 7  ;;  %v11_v8 = vld [vmem:[%s70_s1] sm:$0xff] }
   0x3   :  { %v20_v5 = vunpack.c.0.s8 %v19_v3 }
   0x5   :  { %v23_v7 = vsub.s32 %v20_v5, %v22_v6 }
  0x81   :  { %v17_v10 = vpop.permute.xlu0 %16 }
  0x82   :  { %v24_v11 = vrot.slane %v17_v10, %v23_v7 }
  0x84   :  { %v26_v12 = vmul.f32 %v24_v11, %v11_v8  ;;  %v27_v13 = vmul.f32 %v24_v11, %v12_v9 }
  0x86   :  { %28 = vst [vmem:[%s71_s2] sm:$0xff] %v26_v12  ;;  %29 = vst [vmem:[%s71_s2 + $0x8] sm:$0xff] %v27_v13 }

</bundles_post_ra>
